<compile_context>
chip_gen: v6e
topology: v6e:2x2x1
jax: 0.10.0
libtpu: 0.0.40
codegen_flags: <defaults>
</compile_context>

<pallas_src>
import functools

import jax
import jax.numpy as jnp
from jax.experimental import pallas as pl
from jax.experimental.pallas import tpu as pltpu


def _implicit_a_kernel(imp_ref, x_ref, o_ref):
    # imp_ref: (TR, 1); x_ref / o_ref: (TR, THW).  One VPU broadcast-add in
    # the input dtype (imp is pre-cast in the wrapper).
    o_ref[...] = (x_ref[...] + imp_ref[...]).astype(o_ref.dtype)


def _round_up(x: int, m: int) -> int:
    return ((x + m - 1) // m) * m


def _tile_sizes(rows: int, hw: int, itemsize: int) -> tuple[int, int]:
    """Pick (row tile, spatial tile) sizes.

    Tiles are multiples of the dtype sublane granularity / 128 lanes; the grid
    uses pl.cdiv so partial edge blocks are masked by Pallas (always legal).
    """
    sub = {4: 8, 2: 16, 1: 32}.get(itemsize, 8)

    # Per-generation block byte budget: 8 MiB is safe everywhere (4 in-flight
    # double-buffered blocks + headroom ~ 34 MiB << v7x's 64 MiB physical
    # VMEM); chips with >= 100 MiB VMEM (v5e/v6e) get 16 MiB blocks.
    block_budget = 8 << 20
    try:
        if pltpu.get_tpu_info().vmem_capacity_bytes >= (100 << 20):
            block_budget = 16 << 20
    except Exception:  # pragma: no cover - conservative fallback off-TPU
        pass

    tr_cap = 512
    # Lane tile scaled by 1/itemsize so block bytes stay constant across
    # dtypes (f32 -> 4096/8192, bf16 -> 8192/16384, int8 -> 16384/32768).
    thw_cap = max(128, block_budget // (tr_cap * itemsize))

    tr = min(tr_cap, _round_up(rows, sub))
    thw = min(thw_cap, _round_up(hw, 128))

    # Megacore (v7x): make sure there are at least 2 grid blocks along a
    # "parallel" axis when the problem allows it, so neither TC sits idle.
    if pl.cdiv(rows, tr) * pl.cdiv(hw, thw) == 1:
        if rows > sub:
            tr = _round_up(pl.cdiv(rows, 2), sub)
        elif hw > 128:
            thw = _round_up(pl.cdiv(hw, 2), 128)

    return tr, thw


def implicit_a(x_nchw: jax.Array, implicit: jax.Array, *, use_pallas=None) -> jax.Array:
    """Forward pass of ImplicitA: out = implicit + x.

    Args:
      x_nchw: (N, C, H, W) input.
      implicit: (1, C, 1, 1) learned implicit parameter.
      use_pallas: None (auto: Pallas only when the tensor is large enough to
        amortize launch overhead), True (force Pallas), False (plain JAX).
    Returns:
      (N, C, H, W) output, in x's dtype.
    """
    N, C, H, W = x_nchw.shape
    HW = H * W
    rows = N * C
    dtype = x_nchw.dtype
    itemsize = jnp.dtype(dtype).itemsize
    total_bytes = rows * HW * itemsize

    if use_pallas is None:
        # Below ~1 MiB the fixed pallas_call launch/pipeline overhead exceeds
        # the whole HBM transfer; let XLA fuse the tiny broadcast add instead.
        use_pallas = total_bytes >= (1 << 20)

    if not use_pallas:
        return x_nchw + implicit.astype(dtype)

    # Dense 2D problem: rows = N*C (sublane axis), cols = H*W (lane axis).
    x2 = x_nchw.reshape(rows, HW)
    # One implicit value per row (row r -> channel r % C), cast so the kernel
    # add never promotes narrow inputs to f32.
    imp_col = (
        jnp.broadcast_to(implicit.reshape(1, C), (N, C))
        .reshape(rows, 1)
        .astype(dtype)
    )

    tr, thw = _tile_sizes(rows, HW, itemsize)
    grid = (pl.cdiv(rows, tr), pl.cdiv(HW, thw))

    # Explicit VMEM budget: double-buffered x-in + out blocks, the tiny
    # (lane-padded) implicit column, plus headroom.
    block_bytes = tr * thw * itemsize
    vmem_limit = 4 * block_bytes + 2 * tr * 128 * 4 + (2 << 20)
    vmem_limit = int(min(max(vmem_limit, 8 << 20), 100 << 20))

    cost = pl.CostEstimate(
        flops=rows * HW,
        bytes_accessed=2 * rows * HW * itemsize + rows * itemsize,
        transcendentals=0,
    )

    out2 = pl.pallas_call(
        _implicit_a_kernel,
        out_shape=jax.ShapeDtypeStruct((rows, HW), dtype),
        grid_spec=pltpu.PrefetchScalarGridSpec(
            num_scalar_prefetch=0,
            grid=grid,
            in_specs=[
                # per-row implicit value: only the row tile index changes
                pl.BlockSpec((tr, 1), lambda r, s: (r, 0)),
                # dense (row tile, spatial tile) of x
                pl.BlockSpec((tr, thw), lambda r, s: (r, s)),
            ],
            out_specs=pl.BlockSpec((tr, thw), lambda r, s: (r, s)),
        ),
        # Output has identical shape/dtype to x2: allow in-place reuse of x's
        # HBM buffer when the caller donates it (XLA copies otherwise).
        input_output_aliases={1: 0},
        cost_estimate=cost,
        compiler_params=pltpu.CompilerParams(
            dimension_semantics=("parallel", "parallel"),
            vmem_limit_bytes=vmem_limit,
        ),
    )(imp_col, x2)

    return out2.reshape(N, C, H, W)


if __name__ == "__main__":
    # Module config: in_channels=4, mean=0.0, std=0.02
    N, C, H, W = 2, 4, 16, 16
    mean, std = 0.0, 0.02

    key = jax.random.PRNGKey(0)
    k_x, k_imp = jax.random.split(key)

    x = jax.random.normal(k_x, (N, C, H, W), dtype=jnp.float32)
    # Deterministic init of the implicit parameter (normal(mean, std)),
    # mirroring nn.init.normal_ on a (1, C, 1, 1) tensor.
    implicit = mean + std * jax.random.normal(k_imp, (1, C, 1, 1), dtype=jnp.float32)

    # Reference computed up front with plain JAX (robust even with aliasing).
    ref = implicit + x

    # Force the Pallas path for the test shape (it is below the auto-bypass
    # threshold) so the kernel itself is exercised.
    run = jax.jit(functools.partial(implicit_a, use_pallas=True))
    out = jax.block_until_ready(run(x, implicit))

    assert out.shape == (N, C, H, W)
    assert out.dtype == x.dtype
    assert jnp.allclose(out, ref, atol=1e-6, rtol=1e-6)

    print("KERNEL_OK")
</pallas_src>

<mosaic_0001>
module attributes {stable_mosaic.version = 11 : i64} {
  func.func @_implicit_a_kernel(%arg0: i32, %arg1: i32, %arg2: memref<8x1xf32, #tpu.memory_space<vmem>>, %arg3: memref<8x128xf32, #tpu.memory_space<vmem>>, %arg4: memref<8x128xf32, #tpu.memory_space<vmem>>) attributes {dimension_semantics = [#tpu.dimension_semantics<parallel>, #tpu.dimension_semantics<parallel>], iteration_bounds = array<i64: 1, 2>, scalar_prefetch = 0 : i64, scratch_operands = 0 : i64, tpu.core_type = #tpu.core_type<tc>, window_params = [{transform_indices = @transform_0, window_bounds = array<i64: 8, 1>}, {transform_indices = @transform_1, window_bounds = array<i64: 8, 128>}, {transform_indices = @transform_2, window_bounds = array<i64: 8, 128>}]} {
    %c0 = arith.constant 0 : index
    %c0_0 = arith.constant 0 : index
    %0 = vector.load %arg3[%c0, %c0_0] : memref<8x128xf32, #tpu.memory_space<vmem>>, vector<8x128xf32>
    %c0_1 = arith.constant 0 : index
    %c0_2 = arith.constant 0 : index
    %1 = vector.load %arg2[%c0_1, %c0_2] : memref<8x1xf32, #tpu.memory_space<vmem>>, vector<8x1xf32>
    %2 = vector.broadcast %1 : vector<8x1xf32> to vector<8x128xf32>
    %3 = arith.addf %0, %2 : vector<8x128xf32>
    %c0_3 = arith.constant 0 : index
    %c0_4 = arith.constant 0 : index
    %4 = vector.load %arg4[%c0_3, %c0_4] : memref<8x128xf32, #tpu.memory_space<vmem>>, vector<8x128xf32>
    tpu.vector_store %arg4[%c0_3, %c0_4], %3 {strides = array<i32>} : memref<8x128xf32, #tpu.memory_space<vmem>>, vector<8x128xf32>,
    return
  }
  func.func @transform_0(%arg0: i32, %arg1: i32) -> (i32, i32) {
    %c0_i32 = arith.constant 0 : i32
    %c0_i32_0 = arith.constant 0 : i32
    return %arg0, %c0_i32 : i32, i32
  }
  func.func @transform_1(%arg0: i32, %arg1: i32) -> (i32, i32) {
    %c0_i32 = arith.constant 0 : i32
    return %arg0, %arg1 : i32, i32
  }
  func.func @transform_2(%arg0: i32, %arg1: i32) -> (i32, i32) {
    %c0_i32 = arith.constant 0 : i32
    return %arg0, %arg1 : i32, i32
  }
}

</mosaic_0001>

<bundles_post_ra>
// kernel: implicit_a.1
= control target key start
LH: loop header
LB: loop body
LE: loop exit
PB: predicated region body
PF: predicated region fallthrough
CT: control target
= control target key end

     0   :  { %s376_s9 = smov 0   ;;  %s378_s10 = smov 0   ;;  %s400_s0 = inlined_call_operand.vmem [shape: f32[8,1], index: 0, kind: input, shape index: {}]   ;;  %s401_s1 = inlined_call_operand.vmem [shape: f32[8,256], index: 1, kind: input, shape index: {}, may-alias: {1,2}]   ;;  %s402_s2 = inlined_call_operand.vmem [shape: f32[8,256], index: 2, kind: output, shape index: {}, may-alias: {1,2}]  }
   0x1   :  { %s380_s11 = smov 0  }
   0x2 LB: > { %s21_s12 = sadd.s32 1, %s354_s10  ;;  %p305_p0 = scmp.ge.s32.totalorder %s358_s11, 1  ;;  %s358_s11 = sphi %s380_s11, %s12_s11   ;;  %s354_s10 = sphi %s378_s10, %s404_s10   ;;  %s350_s9 = sphi %s376_s9, %s403_s9  }
   0x3   : > { %p22_p1 = scmp.ge.s32.totalorder %s21_s12, 2  ;;  %p140_p2 = scmp.lt.s32.totalorder %s358_s11, 3 }
   0x5   : > { %s406_s12 = smov (%p22_p1, %s21_s12), 0  ;;  %p141_p3 = pnand %p305_p0, %p140_p2 }
   0x6   : > { %p178_p4 = scmp.lt.s32.totalorder (!%p141_p3), %s350_s9, 1 }
   0x7   : > { %144 = sbr.rel (%p141_p3) target bundleno = 141 (0x8d), region = 28 }
   0xc   : > { %v193_v0 = vld [vmem:[%s400_s0] sm:$0xff]  ;;  %v360_v1 = vmov 0   ;;  %s408_s9 = smov (!%p178_p4, %s350_s9), 1 }
   0xd   : > { %335 = vset.pattern.permute.xlu0 %v360_v1  ;;  %s306_s15 = sshll.u32 %s408_s9, 3 }
   0xe   : > { %196 = vperm.xlu0 %335, %v193_v0   ;;  %s183_s18 = scalar_lea.vmem %s401_s1, %s306_s15  ;;  %s191_s21 = scalar_lea.vmem %s402_s2, %s306_s15 }
   0xf   : > { %v192_v2 = vld [vmem:[%s183_s18] sm:$0xff] }
  0x89   : > { %v197_v3 = vpop.permute.xlu0 %196 }
  0x8a   : > { %v199_v4 = vadd.f32 %v197_v3, %v192_v2 }
  0x8c   : > { %200 = vst [vmem:[%s191_s21] sm:$0xff] %v199_v4 }
  0x8d PF: > { %s12_s11 = sadd.s32 1, %s358_s11   ;;  %s403_s9 = smov %s354_s10 }
  0x8e   : > { %p9_p5 = scmp.ge.s32.totalorder %s12_s11, 4   ;;  %s404_s10 = smov %s406_s12 }
  0x90   :  { %11 = sbr.rel (!%p9_p5) target bundleno = 2 (0x2), region = 61 }

</bundles_post_ra>
